<compile_context>
chip_gen: v7x
topology: tpu7x:2x2x1
jax: 0.10.0
libtpu: 0.0.40
codegen_flags: <defaults>
</compile_context>

<pallas_src>
import functools

import jax
import jax.numpy as jnp
from jax.experimental import pallas as pl
from jax.experimental.pallas import tpu as pltpu


def _round_up(x, m):
    return (x + m - 1) // m * m


def _lm_head_kernel(x_ref, g_ref, b_ref, w_ref, o_ref, xn_ref, *, eps):
    # x_ref: (tm, H) token tile, full hidden dim
    # g_ref/b_ref: (1, H) LayerNorm scale / shift
    # w_ref: (H, tn) slice of the lm_head weight
    # o_ref: (tm, tn) logits tile
    # xn_ref: (tm, H) VMEM scratch caching the normalized activations

    # Compute LayerNorm only on the first vocab step for this token tile; the
    # vocab grid axis is innermost and marked "arbitrary", so the cached value
    # is valid for all subsequent vocab tiles of the same token tile.
    @pl.when(pl.program_id(1) == 0)
    def _():
        x = x_ref[...].astype(jnp.float32)
        mean = jnp.mean(x, axis=-1, keepdims=True)
        var = jnp.mean(jnp.square(x - mean), axis=-1, keepdims=True)
        xn = (x - mean) * jax.lax.rsqrt(var + eps)
        xn = xn * g_ref[...].astype(jnp.float32) + b_ref[...].astype(jnp.float32)
        xn_ref[...] = xn.astype(xn_ref.dtype)

    # Native-dtype MXU matmul (no f32 up-cast of the weight stream); f32 accum.
    o_ref[...] = jnp.dot(
        xn_ref[...], w_ref[...], preferred_element_type=jnp.float32
    ).astype(o_ref.dtype)


def phi_causal_lm_head(hidden_states, ln_weight, ln_bias, lm_head_weight,
                       *, eps=1e-5, tm=256, tn=1024):
    """hidden_states: [T, H]; ln_weight/ln_bias: [1, H]; lm_head_weight: [H, V]
    -> logits [T, V]."""
    T, H = hidden_states.shape
    H2, V = lm_head_weight.shape
    assert H == H2

    # Token-tile sublane alignment: 16 for bf16 activations, 8 otherwise.
    sub = 16 if hidden_states.dtype == jnp.bfloat16 else 8
    tm = max(sub, min(tm, _round_up(T, sub)))
    tn = max(128, min(tn, _round_up(V, 128)))

    Tp = _round_up(T, tm)
    Vp = _round_up(V, tn)
    x = hidden_states
    w = lm_head_weight
    if Tp != T:
        x = jnp.pad(x, ((0, Tp - T), (0, 0)))
    if Vp != V:
        w = jnp.pad(w, ((0, 0), (0, Vp - V)))

    # Cache the normalized activations in the weight's dtype so the matmul is
    # native (bf16 x bf16 when the lm_head weight is bf16).
    xn_dtype = w.dtype

    def _isz(dt):
        return jnp.dtype(dt).itemsize

    vmem_bytes = (
        2 * H * tn * _isz(w.dtype)            # double-buffered weight tile
        + 2 * tm * H * _isz(x.dtype)          # double-buffered activation tile
        + 2 * tm * tn * _isz(x.dtype)         # double-buffered output tile
        + tm * H * _isz(xn_dtype)             # xn scratch
        + 4 * H * _isz(ln_weight.dtype)       # LN weight / bias tiles
    )
    # Headroom, floor at the default scoped limit, cap at v7x-safe 64 MiB.
    vmem_limit = max(32 << 20, min(int(vmem_bytes * 1.5) + (2 << 20), 64 << 20))

    kernel = functools.partial(_lm_head_kernel, eps=eps)

    out = pl.pallas_call(
        kernel,
        out_shape=jax.ShapeDtypeStruct((Tp, Vp), hidden_states.dtype),
        grid_spec=pltpu.PrefetchScalarGridSpec(
            num_scalar_prefetch=0,
            grid=(Tp // tm, Vp // tn),
            in_specs=[
                pl.BlockSpec((tm, H), lambda i, j: (i, 0)),   # hidden states
                pl.BlockSpec((1, H), lambda i, j: (0, 0)),    # ln weight
                pl.BlockSpec((1, H), lambda i, j: (0, 0)),    # ln bias
                pl.BlockSpec((H, tn), lambda i, j: (0, j)),   # lm_head weight
            ],
            out_specs=pl.BlockSpec((tm, tn), lambda i, j: (i, j)),
            scratch_shapes=[pltpu.VMEM((tm, H), xn_dtype)],
        ),
        compiler_params=pltpu.CompilerParams(
            # Token axis can shard across TensorCores; vocab axis must run
            # in-order because it reuses the LN scratch computed at j == 0.
            dimension_semantics=("parallel", "arbitrary"),
            vmem_limit_bytes=vmem_limit,
        ),
    )(x, ln_weight, ln_bias, w)

    if Tp != T or Vp != V:
        out = out[:T, :V]
    return out


def _reference(hidden_states, ln_weight, ln_bias, lm_head_weight, eps):
    x = hidden_states.astype(jnp.float32)
    mean = jnp.mean(x, axis=-1, keepdims=True)
    var = jnp.mean(jnp.square(x - mean), axis=-1, keepdims=True)
    xn = (x - mean) * jax.lax.rsqrt(var + eps)
    xn = xn * ln_weight[0].astype(jnp.float32) + ln_bias[0].astype(jnp.float32)
    return xn @ lm_head_weight.astype(jnp.float32)


if __name__ == "__main__":
    eps = 1e-5
    key = jax.random.PRNGKey(0)
    k1, k2, k3, k4 = jax.random.split(key, 4)

    # Small, Phi-like synthetic shapes: T tokens, hidden size H, vocab V.
    T, H, V = 8, 128, 256
    hidden_states = jax.random.normal(k1, (T, H), dtype=jnp.float32)
    ln_weight = 1.0 + 0.1 * jax.random.normal(k2, (1, H), dtype=jnp.float32)
    ln_bias = 0.1 * jax.random.normal(k3, (1, H), dtype=jnp.float32)
    lm_head_weight = 0.02 * jax.random.normal(k4, (H, V), dtype=jnp.float32)

    logits = phi_causal_lm_head(hidden_states, ln_weight, ln_bias,
                                lm_head_weight, eps=eps)
    logits = jax.block_until_ready(logits)
    ref = _reference(hidden_states, ln_weight, ln_bias, lm_head_weight, eps)
    assert logits.shape == (T, V)
    assert jnp.allclose(logits, ref, atol=1e-4, rtol=1e-4)

    # Ragged shapes (non-multiples of tile sizes) exercise the padding path.
    T2, V2 = 5, 200
    hs2 = jax.random.normal(k1, (T2, H), dtype=jnp.float32)
    w2 = 0.02 * jax.random.normal(k4, (H, V2), dtype=jnp.float32)
    logits2 = phi_causal_lm_head(hs2, ln_weight, ln_bias, w2, eps=eps)
    logits2 = jax.block_until_ready(logits2)
    ref2 = _reference(hs2, ln_weight, ln_bias, w2, eps)
    assert logits2.shape == (T2, V2)
    assert jnp.allclose(logits2, ref2, atol=1e-4, rtol=1e-4)

    print("KERNEL_OK")
</pallas_src>

<mosaic_0001>
module attributes {stable_mosaic.version = 11 : i64} {
  func.func @_lm_head_kernel(%arg0: i32, %arg1: i32, %arg2: memref<8x128xf32, #tpu.memory_space<vmem>>, %arg3: memref<1x128xf32, #tpu.memory_space<vmem>>, %arg4: memref<1x128xf32, #tpu.memory_space<vmem>>, %arg5: memref<128x256xf32, #tpu.memory_space<vmem>>, %arg6: memref<8x256xf32, #tpu.memory_space<vmem>>, %arg7: memref<8x128xf32, #tpu.memory_space<vmem>>) attributes {dimension_semantics = [#tpu.dimension_semantics<parallel>, #tpu.dimension_semantics<arbitrary>], iteration_bounds = array<i64: 1, 1>, scalar_prefetch = 0 : i64, scratch_operands = 1 : i64, tpu.core_type = #tpu.core_type<tc>, window_params = [{transform_indices = @transform_0, window_bounds = array<i64: 8, 128>}, {pipeline_mode = #tpu.pipeline_mode<synchronous>, transform_indices = @transform_1, window_bounds = array<i64: 1, 128>}, {pipeline_mode = #tpu.pipeline_mode<synchronous>, transform_indices = @transform_2, window_bounds = array<i64: 1, 128>}, {transform_indices = @transform_3, window_bounds = array<i64: 128, 256>}, {transform_indices = @transform_4, window_bounds = array<i64: 8, 256>}]} {
    %c0_i32 = arith.constant 0 : i32
    %0 = arith.cmpi eq, %arg1, %c0_i32 : i32
    %1 = arith.extui %0 : i1 to i32
    %c0_i32_0 = arith.constant 0 : i32
    %2 = arith.cmpi ne, %1, %c0_i32_0 : i32
    scf.if %2 {
      %c0_6 = arith.constant 0 : index
      %c0_7 = arith.constant 0 : index
      %7 = vector.load %arg2[%c0_6, %c0_7] : memref<8x128xf32, #tpu.memory_space<vmem>>, vector<8x128xf32>
      %cst_8 = arith.constant dense<0.000000e+00> : vector<8xf32>
      %8 = vector.multi_reduction <add>, %7, %cst_8 [1] : vector<8x128xf32> to vector<8xf32>
      %9 = vector.shape_cast %8 : vector<8xf32> to vector<8x1xf32>
      %cst_9 = arith.constant 1.280000e+02 : f32
      %10 = vector.broadcast %cst_9 : f32 to vector<8x1xf32>
      %11 = arith.divf %9, %10 : vector<8x1xf32>
      %12 = vector.broadcast %11 : vector<8x1xf32> to vector<8x128xf32>
      %13 = arith.subf %7, %12 : vector<8x128xf32>
      %14 = arith.mulf %13, %13 : vector<8x128xf32>
      %cst_10 = arith.constant dense<0.000000e+00> : vector<8xf32>
      %15 = vector.multi_reduction <add>, %14, %cst_10 [1] : vector<8x128xf32> to vector<8xf32>
      %16 = vector.shape_cast %15 : vector<8xf32> to vector<8x1xf32>
      %cst_11 = arith.constant 1.280000e+02 : f32
      %17 = vector.broadcast %cst_11 : f32 to vector<8x1xf32>
      %18 = arith.divf %16, %17 : vector<8x1xf32>
      %19 = vector.broadcast %11 : vector<8x1xf32> to vector<8x128xf32>
      %20 = arith.subf %7, %19 : vector<8x128xf32>
      %cst_12 = arith.constant 9.99999974E-6 : f32
      %21 = vector.broadcast %cst_12 : f32 to vector<8x1xf32>
      %22 = arith.addf %18, %21 : vector<8x1xf32>
      %23 = math.rsqrt %22 : vector<8x1xf32>
      %24 = vector.broadcast %23 : vector<8x1xf32> to vector<8x128xf32>
      %25 = arith.mulf %20, %24 : vector<8x128xf32>
      %c0_13 = arith.constant 0 : index
      %c0_14 = arith.constant 0 : index
      %26 = vector.load %arg3[%c0_13, %c0_14] : memref<1x128xf32, #tpu.memory_space<vmem>>, vector<1x128xf32>
      %27 = vector.broadcast %26 : vector<1x128xf32> to vector<8x128xf32>
      %28 = arith.mulf %25, %27 : vector<8x128xf32>
      %c0_15 = arith.constant 0 : index
      %c0_16 = arith.constant 0 : index
      %29 = vector.load %arg4[%c0_15, %c0_16] : memref<1x128xf32, #tpu.memory_space<vmem>>, vector<1x128xf32>
      %30 = vector.broadcast %29 : vector<1x128xf32> to vector<8x128xf32>
      %31 = arith.addf %28, %30 : vector<8x128xf32>
      %c0_17 = arith.constant 0 : index
      %c0_18 = arith.constant 0 : index
      %32 = vector.load %arg7[%c0_17, %c0_18] : memref<8x128xf32, #tpu.memory_space<vmem>>, vector<8x128xf32>
      tpu.vector_store %arg7[%c0_17, %c0_18], %31 {strides = array<i32>} : memref<8x128xf32, #tpu.memory_space<vmem>>, vector<8x128xf32>,
    } else {
    }
    %c0 = arith.constant 0 : index
    %c0_1 = arith.constant 0 : index
    %3 = vector.load %arg7[%c0, %c0_1] : memref<8x128xf32, #tpu.memory_space<vmem>>, vector<8x128xf32>
    %c0_2 = arith.constant 0 : index
    %c0_3 = arith.constant 0 : index
    %4 = vector.load %arg5[%c0_2, %c0_3] : memref<128x256xf32, #tpu.memory_space<vmem>>, vector<128x256xf32>
    %cst = arith.constant dense<0.000000e+00> : vector<8x256xf32>
    %5 = tpu.matmul %3, %4, %cst {dimension_numbers = #tpu.dot_dimension_numbers<[1], [0], [0], [1], [0, 0, 1, 1], [], []>} : vector<8x128xf32>, vector<128x256xf32>, vector<8x256xf32> -> vector<8x256xf32>
    %c0_4 = arith.constant 0 : index
    %c0_5 = arith.constant 0 : index
    %6 = vector.load %arg6[%c0_4, %c0_5] : memref<8x256xf32, #tpu.memory_space<vmem>>, vector<8x256xf32>
    tpu.vector_store %arg6[%c0_4, %c0_5], %5 {strides = array<i32>} : memref<8x256xf32, #tpu.memory_space<vmem>>, vector<8x256xf32>,
    return
  }
  func.func @transform_0(%arg0: i32, %arg1: i32) -> (i32, i32) {
    %c0_i32 = arith.constant 0 : i32
    %c0_i32_0 = arith.constant 0 : i32
    return %arg0, %c0_i32 : i32, i32
  }
  func.func @transform_1(%arg0: i32, %arg1: i32) -> (i32, i32) {
    %c0_i32 = arith.constant 0 : i32
    %c0_i32_0 = arith.constant 0 : i32
    %c0_i32_1 = arith.constant 0 : i32
    return %c0_i32, %c0_i32_0 : i32, i32
  }
  func.func @transform_2(%arg0: i32, %arg1: i32) -> (i32, i32) {
    %c0_i32 = arith.constant 0 : i32
    %c0_i32_0 = arith.constant 0 : i32
    %c0_i32_1 = arith.constant 0 : i32
    return %c0_i32, %c0_i32_0 : i32, i32
  }
  func.func @transform_3(%arg0: i32, %arg1: i32) -> (i32, i32) {
    %c0_i32 = arith.constant 0 : i32
    %c0_i32_0 = arith.constant 0 : i32
    return %c0_i32, %arg1 : i32, i32
  }
  func.func @transform_4(%arg0: i32, %arg1: i32) -> (i32, i32) {
    %c0_i32 = arith.constant 0 : i32
    return %arg0, %arg1 : i32, i32
  }
}

</mosaic_0001>

<bundles_post_ra>
// kernel: tpu_custom_call.1
= control target key start
LH: loop header
LB: loop body
LE: loop exit
PB: predicated region body
PF: predicated region fallthrough
CT: control target
= control target key end

     0   :  { %9 = vsyncpa [#allocation4], 0  ;;  %s394_s0 = inlined_call_operand.hbm [shape: f32[8,128], index: 0, kind: input, shape index: {}]   ;;  %s395_s1 = inlined_call_operand.vmem [shape: f32[1,128], index: 1, kind: input, shape index: {}]   ;;  %s396_s2 = inlined_call_operand.vmem [shape: f32[1,128], index: 2, kind: input, shape index: {}]   ;;  %s397_s3 = inlined_call_operand.hbm [shape: f32[128,256], index: 3, kind: input, shape index: {}]   ;;  %s398_s4 = inlined_call_operand.hbm [shape: f32[8,256], index: 4, kind: output, shape index: {}]  }
   0x1   :  { %10 = vsyncpa [#allocation7], 0 }
   0x2   :  { %11 = vsyncpa [#allocation5], 0  ;;  %s314_s15 = smov [#allocation3]   ;;  %s315_s17 = smov [#allocation6]  }
   0x3   :  { %s18_s16 = sshll.u32 %s314_s15, 4  ;;  %s31_s18 = sshll.u32 %s315_s17, 4  ;;  %s19_s16 = int_to_ptr.vmem [resolvable:$true] %s18_s16  ;;  %s345_s18 = int_to_ptr.vmem [resolvable:$true] %s31_s18 }
   0x4   :  { %s242_s21 = scalar_lea.hbm %s394_s0, 128 }
   0x5   :  { %p243_p0 = scmp.ne.s32.totalorder %s394_s0, %s242_s21  ;;  %p246_p1 = scmp.lt.u32.totalorder %s242_s21, %s394_s0 }
   0x7   :  { %p248_p2 = pnand %p246_p1, %p243_p0 }
   0x9   :  { %251 = shalt.err (!%p248_p2)
}
   0xa   :  { %s252_s26 = scalar_lea.vmem %s19_s16, 128  ;;  %p257_p4 = scmp.lt.s32.totalorder %s19_s16, %s19_s16 }
   0xb   :  { %p253_p3 = scmp.ne.s32.totalorder %s19_s16, %s252_s26  ;;  %p258_p5 = scmp.lt.s32.totalorder %s252_s26, %s252_s26 }
   0xd   :  { %p259_p6 = por %p258_p5, %p257_p4 }
   0xf   :  { %p260_p7 = pnand %p259_p6, %p253_p3 }
  0x11   :  { %263 = shalt.err (!%p260_p7)
}
  0x12   :  { %21 = dma.hbm_to_vmem [thread:$0]  %s394_s0, 128, %s19_s16, [#allocation4]  }
  0x13   :  { %s264_s5 = scalar_lea.hbm %s397_s3, 4096 }
  0x14   :  { %p265_p8 = scmp.ne.s32.totalorder %s397_s3, %s264_s5  ;;  %p268_p9 = scmp.lt.u32.totalorder %s264_s5, %s397_s3 }
  0x16   :  { %p270_p10 = pnand %p268_p9, %p265_p8 }
  0x18   :  { %273 = shalt.err (!%p270_p10)
}
  0x19   :  { %s274_s10 = scalar_lea.vmem %s345_s18, 4096  ;;  %p279_p12 = scmp.lt.s32.totalorder %s345_s18, %s345_s18 }
  0x1a   :  { %p275_p11 = scmp.ne.s32.totalorder %s345_s18, %s274_s10  ;;  %p280_p13 = scmp.lt.s32.totalorder %s274_s10, %s274_s10 }
  0x1c   :  { %p281_p0 = por %p280_p13, %p279_p12 }
  0x1e   :  { %p282_p1 = pnand %p281_p0, %p275_p11 }
  0x20   :  { %285 = shalt.err (!%p282_p1)
}
  0x21   :  { %s316_s0 = smov 256   ;;  %s317_s11 = smov 16  }
  0x22   :  { %37 = dma.hbm_to_vmem [thread:$0]  %s397_s3, 4096, %s345_s18, [#allocation7], %s316_s0, %s316_s0, %s317_s11  }
  0x23   :  { %308 = dma.done.wait [#allocation4], 128  }
  0x24   :  { %309 = vsyncadd [#allocation4], 4294967168 }
  0x25   :  { %310 = dma.done.wait [#allocation7], 4096  }
  0x26   :  { %311 = vsyncadd [#allocation7], 4294963200  ;;  %v48_v0 = vld [vmem:[#allocation3] sm:$0xff]  ;;  %v80_v1 = vld [vmem:[#allocation6 + $0x8] sm:$0xff]  ;;  %v318_v42 = vmov 0.0   ;;  %s319_s17 = smov [#allocation8]  }
  0x27   :  { %49 = vadd.xlane.f32.xlu0 %v48_v0  ;;  %v82_v2 = vld [vmem:[#allocation6 + $0x18] sm:$0xff]  ;;  %v79_v3 = vld [vmem:[#allocation6] sm:$0xff]  ;;  %v81_v5 = vld [vmem:[#allocation6 + $0x10] sm:$0xff]  ;;  %175 = vmatprep.mubr.f32.mxu0 %v318_v42  ;;  %s190_s18 = sshll.u32 %s319_s17, 4  ;;  %s191_s18 = int_to_ptr.vmem [resolvable:$true] %s190_s18 }
  0x28   :  { %v202_v4 = vpack.c.bf16 %v82_v2, %v80_v1  ;;  %v84_v6 = vld [vmem:[#allocation6 + $0x28] sm:$0xff]  ;;  %v86_v7 = vld [vmem:[#allocation6 + $0x38] sm:$0xff]  ;;  %v204_v8 = vpack.c.bf16 %v81_v5, %v79_v3  ;;  %v83_v10 = vld [vmem:[#allocation6 + $0x20] sm:$0xff]  ;;  %s286_s19 = scalar_lea.vmem %s191_s18, 256  ;;  %p291_p3 = scmp.lt.s32.totalorder %s191_s18, %s191_s18 }
  0x29   :  { %v206_v9 = vpack.c.bf16 %v86_v7, %v84_v6  ;;  %v85_v11 = vld [vmem:[#allocation6 + $0x30] sm:$0xff]  ;;  %v88_v12 = vld [vmem:[#allocation6 + $0x48] sm:$0xff]  ;;  %v90_v13 = vld [vmem:[#allocation6 + $0x58] sm:$0xff]  ;;  %p287_p2 = scmp.ne.s32.totalorder %s191_s18, %s286_s19  ;;  %p292_p4 = scmp.lt.s32.totalorder %s286_s19, %s286_s19 }
  0x2a   :  { %203 = vmatprep.subr.bf16.mxu0 %v202_v4  ;;  %v208_v14 = vpack.c.bf16 %v85_v11, %v83_v10  ;;  %v210_v15 = vpack.c.bf16 %v90_v13, %v88_v12  ;;  %v87_v16 = vld [vmem:[#allocation6 + $0x40] sm:$0xff]  ;;  %v89_v17 = vld [vmem:[#allocation6 + $0x50] sm:$0xff]  ;;  %v92_v23 = vld [vmem:[#allocation6 + $0x68] sm:$0xff] }
  0x2b   :  { %205 = vmatpush1.bf16.msra.mxu0 %v204_v8  ;;  %v212_v18 = vpack.c.bf16 %v89_v17, %v87_v16  ;;  %v94_v24 = vld [vmem:[#allocation6 + $0x78] sm:$0xff]  ;;  %v91_v26 = vld [vmem:[#allocation6 + $0x60] sm:$0xff]  ;;  %v93_v27 = vld [vmem:[#allocation6 + $0x70] sm:$0xff]  ;;  %p293_p5 = por %p292_p4, %p291_p3 }
  0x2c   :  { %207 = vmatprep.subr.bf16.mxu0 %v206_v9  ;;  %v214_v25 = vpack.c.bf16 %v94_v24, %v92_v23  ;;  %v216_v28 = vpack.c.bf16 %v93_v27, %v91_v26  ;;  %v96_v29 = vld [vmem:[#allocation6 + $0x88] sm:$0xff]  ;;  %v98_v30 = vld [vmem:[#allocation6 + $0x98] sm:$0xff]  ;;  %v95_v32 = vld [vmem:[#allocation6 + $0x80] sm:$0xff] }
  0x2d   :  { %v218_v31 = vpack.c.bf16 %v98_v30, %v96_v29  ;;  %v97_v33 = vld [vmem:[#allocation6 + $0x90] sm:$0xff]  ;;  %v100_v35 = vld [vmem:[#allocation6 + $0xa8] sm:$0xff]  ;;  %v102_v36 = vld [vmem:[#allocation6 + $0xb8] sm:$0xff]  ;;  %p294_p6 = pnand %p293_p5, %p287_p2 }
  0x2e   :  { %v220_v34 = vpack.c.bf16 %v97_v33, %v95_v32  ;;  %v99_v37 = vld [vmem:[#allocation6 + $0xa0] sm:$0xff]  ;;  %v222_v38 = vpack.c.bf16 %v102_v36, %v100_v35  ;;  %v101_v39 = vld [vmem:[#allocation6 + $0xb0] sm:$0xff]  ;;  %v104_v40 = vld [vmem:[#allocation6 + $0xc8] sm:$0xff] }
  0x2f   :  { %209 = vmatpush1.bf16.msra.mxu0 %v208_v14  ;;  %v106_v41 = vld [vmem:[#allocation6 + $0xd8] sm:$0xff]  ;;  %v224_v43 = vpack.c.bf16 %v101_v39, %v99_v37  ;;  %v103_v45 = vld [vmem:[#allocation6 + $0xc0] sm:$0xff]  ;;  %v105_v46 = vld [vmem:[#allocation6 + $0xd0] sm:$0xff] }
  0x30   :  { %211 = vmatprep.subr.bf16.mxu0 %v210_v15  ;;  %v226_v44 = vpack.c.bf16 %v106_v41, %v104_v40  ;;  %v108_v47 = vld [vmem:[#allocation6 + $0xe8] sm:$0xff]  ;;  %v110_v48 = vld [vmem:[#allocation6 + $0xf8] sm:$0xff]  ;;  %v228_v49 = vpack.c.bf16 %v105_v46, %v103_v45  ;;  %v107_v51 = vld [vmem:[#allocation6 + $0xe0] sm:$0xff] }
  0x31   :  { %v230_v50 = vpack.c.bf16 %v110_v48, %v108_v47  ;;  %v109_v52 = vld [vmem:[#allocation6 + $0xf0] sm:$0xff]  ;;  %v200_v58 = vld [vmem:[%s395_s1] ss:$0 sm:$0xff] }
  0x32   :  { %v232_v53 = vpack.c.bf16 %v109_v52, %v107_v51  ;;  %v201_v60 = vld [vmem:[%s396_s2] ss:$0 sm:$0xff] }
  0x33   :  { %213 = vmatpush1.bf16.msra.mxu0 %v212_v18 }
  0x34   :  { %215 = vmatprep.subr.bf16.mxu0 %v214_v25 }
  0x37   :  { %217 = vmatpush1.bf16.msra.mxu0 %v216_v28 }
  0x38   :  { %219 = vmatprep.subr.bf16.mxu0 %v218_v31 }
  0x3b   :  { %221 = vmatpush1.bf16.msra.mxu0 %v220_v34 }
  0x3c   :  { %223 = vmatprep.subr.bf16.mxu0 %v222_v38 }
  0x3f   :  { %225 = vmatpush1.bf16.msra.mxu0 %v224_v43 }
  0x40   :  { %227 = vmatprep.subr.bf16.mxu0 %v226_v44 }
  0x43   :  { %229 = vmatpush1.bf16.msra.mxu0 %v228_v49 }
  0x44   :  { %231 = vmatprep.subr.bf16.mxu0 %v230_v50 }
  0x47   :  { %233 = vmatpush1.bf16.msra.mxu0 %v232_v53 }
  0xb4   :  { %v50_v19 = vpop.xlane.xlu0 %49 }
  0xb5   :  { %v52_v20 = vmul.f32 0.0078125, %v50_v19 }
  0xb7   :  { %v53_v21 = vsub.f32 %v48_v0, %v52_v20 }
  0xb9   :  { %v54_v22 = vmul.f32 %v53_v21, %v53_v21 }
  0xbb   :  { %55 = vadd.xlane.f32.xlu0 %v54_v22 }
 0x148   :  { %v56_v54 = vpop.xlane.xlu0 %55 }
 0x149   :  { %v57_v55 = vmul.f32 0.0078125, %v56_v54 }
 0x14b   :  { %v58_v56 = vadd.f32 1e-05, %v57_v55 }
 0x14d   :  { %240 = vrsqrt.f32 %v58_v56 }
 0x157   :  { %v241_v57 = vpop.eup %240 }
 0x158   :  { %v60_v59 = vmul.f32 %v241_v57, %v53_v21 }
 0x15a   :  { %v68_v61 = vmul.f32 %v200_v58, %v60_v59 }
 0x15c   :  { %v76_v62 = vadd.f32 %v201_v60, %v68_v61 }
 0x15e   :  { %176 = vmatmul.mubr.f32.vlgmr.msra.gmra.mrb[0].mxu0 %v76_v62 }
 0x231   :  { %v177_v63 = vpop.f32.mrb[0].mxu0 }
 0x232   :  { %182 = vst [vmem:[#allocation8] sm:$0xff] %v177_v63  ;;  %v179_v0 = vpop.f32.mrb[1].mxu0 }
 0x233   :  { %183 = vst [vmem:[#allocation8 + $0x8] sm:$0xff] %v179_v0 }
 0x234   :  { %297 = shalt.err (!%p294_p6)
}
 0x235   :  { %s298_s2 = scalar_lea.hbm %s398_s4, 256 }
 0x236   :  { %p299_p7 = scmp.ne.s32.totalorder %s398_s4, %s298_s2  ;;  %p302_p8 = scmp.lt.u32.totalorder %s298_s2, %s398_s4 }
 0x238   :  { %p304_p9 = pnand %p302_p8, %p299_p7 }
 0x23a   :  { %307 = shalt.err (!%p304_p9)
}
 0x23b   :  { %193 = dma.vmem_to_hbm [thread:$0]  %s191_s18, 256, %s398_s4, [#allocation5]  }
 0x23c   :  { %312 = dma.done.wait [#allocation5], 256  }
 0x23d   :  { %313 = vsyncadd [#allocation5], 4294967040 }
 0x23e   :  { %197 = vsyncpa [#allocation4], 1 }
 0x23f   :  { %198 = vsyncpa [#allocation7], 1 }
 0x240   :  { %199 = vsyncpa [#allocation5], 1 }

</bundles_post_ra>
